<compile_context>
chip_gen: v7x
topology: tpu7x:2x2x1
jax: 0.10.0
libtpu: 0.0.40
codegen_flags: <defaults>
</compile_context>

<pallas_src>
import functools

import jax
import jax.numpy as jnp
from jax.experimental import pallas as pl
from jax.experimental.pallas import tpu as pltpu


def _scale_rows_kernel(x_ref, s_ref, o_ref):
    # x_ref: [TILE_N, F_pad]   s_ref: [TILE_N, 1]   o_ref: [TILE_N, F_pad]
    o_ref[...] = x_ref[...] * s_ref[...]


def _round_up(v, m):
    return (v + m - 1) // m * m


@functools.partial(jax.jit, static_argnames=("num_graphs",))
def _graph_size_norm_impl(x, batch, *, num_graphs):
    n, f = x.shape

    # ---- hoisted degree computation (O(N) scatter-add + gather, in XLA) ----
    counts = jnp.zeros((num_graphs,), jnp.float32).at[batch].add(1.0)   # [G]
    inv_sqrt_deg = counts ** -0.5                 # matches torch .pow(-0.5)
    scale = inv_sqrt_deg[batch].astype(x.dtype).reshape(n, 1)           # [N, 1]

    # ---- pad to lane/sublane-friendly shapes & pick node tile ----
    f_pad = _round_up(f, 128)                     # lane-dense stores
    elem_bytes = jnp.dtype(x.dtype).itemsize
    # keep each (x tile + out tile), double-buffered, to a few MiB of VMEM
    rows_budget = max(8, (4 * 1024 * 1024) // max(1, f_pad * elem_bytes))
    tile_n = min(512, rows_budget, _round_up(n, 8))
    tile_n = max(8, (tile_n // 8) * 8)
    n_pad = _round_up(n, tile_n)

    x_p = jnp.pad(x, ((0, n_pad - n), (0, f_pad - f)))
    s_p = jnp.pad(scale, ((0, n_pad - n), (0, 0)))

    out = pl.pallas_call(
        _scale_rows_kernel,
        out_shape=jax.ShapeDtypeStruct((n_pad, f_pad), x.dtype),
        grid=(n_pad // tile_n,),
        in_specs=[
            pl.BlockSpec((tile_n, f_pad), lambda i: (i, 0)),
            pl.BlockSpec((tile_n, 1), lambda i: (i, 0)),
        ],
        out_specs=pl.BlockSpec((tile_n, f_pad), lambda i: (i, 0)),
        compiler_params=pltpu.CompilerParams(
            dimension_semantics=("parallel",)),
    )(x_p, s_p)

    return out[:n, :f]


def graph_size_norm(x, batch=None, num_graphs=None):
    """Pallas implementation of GraphSizeNorm.

    x:          [N, F] float array
    batch:      [N] int array of graph ids (optional, defaults to zeros)
    num_graphs: static number of graphs (>= batch.max() + 1)
    """
    n, _ = x.shape
    if batch is None:
        batch = jnp.zeros((n,), dtype=jnp.int32)
        num_graphs = 1
    if num_graphs is None:
        raise ValueError("num_graphs must be provided statically when batch is given")
    # Note: batch ids >= num_graphs would yield rsqrt(0); caller must size
    # num_graphs correctly (same contract as torch_geometric.utils.degree).
    return _graph_size_norm_impl(x, batch.astype(jnp.int32),
                                 num_graphs=int(num_graphs))


if __name__ == "__main__":
    key = jax.random.PRNGKey(0)
    N, F, G = 16, 32, 4  # 16 nodes, 32 features, 4 graphs

    x = jax.random.normal(key, (N, F), dtype=jnp.float32)
    # deterministic graph assignment: graphs of sizes 3, 5, 2, 6
    batch = jnp.array([0] * 3 + [1] * 5 + [2] * 2 + [3] * 6, dtype=jnp.int32)

    out = graph_size_norm(x, batch, num_graphs=G)
    out = jax.block_until_ready(out)

    # pure-JAX reference check
    deg = jnp.zeros((G,), jnp.float32).at[batch].add(1.0)
    ref = x * (deg[batch] ** -0.5)[:, None]
    assert jnp.allclose(out, ref, atol=1e-6, rtol=1e-6), "mismatch vs reference"

    # also exercise the batch=None default path (single graph)
    out0 = jax.block_until_ready(graph_size_norm(x))
    ref0 = x * (float(N) ** -0.5)
    assert jnp.allclose(out0, ref0, atol=1e-6, rtol=1e-6), "mismatch (batch=None)"

    # a larger, non-multiple-of-tile shape to exercise tiling/padding paths
    N2, F2, G2 = 777, 200, 7
    x2 = jax.random.normal(jax.random.PRNGKey(1), (N2, F2), dtype=jnp.float32)
    batch2 = jax.random.randint(jax.random.PRNGKey(2), (N2,), 0, G2)
    out2 = jax.block_until_ready(graph_size_norm(x2, batch2, num_graphs=G2))
    deg2 = jnp.zeros((G2,), jnp.float32).at[batch2].add(1.0)
    ref2 = x2 * (deg2[batch2] ** -0.5)[:, None]
    assert jnp.allclose(out2, ref2, atol=1e-5, rtol=1e-5), "mismatch (large case)"

    print("KERNEL_OK")
</pallas_src>

<mosaic_0001>
module attributes {stable_mosaic.version = 11 : i64} {
  func.func private @main(%arg0: i32) attributes {dimension_semantics = [#tpu.dimension_semantics<core_parallel>], iteration_bounds = array<i64: 2>, tpu.core_type = #tpu.core_type<sc_scalar_subcore>, window_params = []} {
    return
  }
}

module attributes {stable_mosaic.version = 11 : i64} {
  func.func private @main(%arg0: i32) attributes {dimension_semantics = [#tpu.dimension_semantics<core_parallel>], iteration_bounds = array<i64: 2>, tpu.core_type = #tpu.core_type<sc_scalar_subcore>, window_params = []} {
    return
  }
}

module attributes {stable_mosaic.version = 11 : i64} {
  func.func @_scale_rows_kernel(%arg0: i32, %arg1: memref<16x128xf32, #tpu.memory_space<vmem>>, %arg2: memref<16x1xf32, #tpu.memory_space<vmem>>, %arg3: memref<16x128xf32, #tpu.memory_space<vmem>>) attributes {dimension_semantics = [#tpu.dimension_semantics<parallel>], iteration_bounds = array<i64: 1>, scalar_prefetch = 0 : i64, scratch_operands = 0 : i64, tpu.core_type = #tpu.core_type<tc>, window_params = [{transform_indices = @transform_0, window_bounds = array<i64: 16, 128>}, {transform_indices = @transform_1, window_bounds = array<i64: 16, 1>}, {transform_indices = @transform_2, window_bounds = array<i64: 16, 128>}]} {
    %c0 = arith.constant 0 : index
    %c0_0 = arith.constant 0 : index
    %0 = vector.load %arg1[%c0, %c0_0] : memref<16x128xf32, #tpu.memory_space<vmem>>, vector<16x128xf32>
    %c0_1 = arith.constant 0 : index
    %c0_2 = arith.constant 0 : index
    %1 = vector.load %arg2[%c0_1, %c0_2] : memref<16x1xf32, #tpu.memory_space<vmem>>, vector<16x1xf32>
    %2 = vector.broadcast %1 : vector<16x1xf32> to vector<16x128xf32>
    %3 = arith.mulf %0, %2 : vector<16x128xf32>
    %c0_3 = arith.constant 0 : index
    %c0_4 = arith.constant 0 : index
    %4 = vector.load %arg3[%c0_3, %c0_4] : memref<16x128xf32, #tpu.memory_space<vmem>>, vector<16x128xf32>
    tpu.vector_store %arg3[%c0_3, %c0_4], %3 {strides = array<i32>} : memref<16x128xf32, #tpu.memory_space<vmem>>, vector<16x128xf32>,
    return
  }
  func.func @transform_0(%arg0: i32) -> (i32, i32) {
    %c0_i32 = arith.constant 0 : i32
    %c0_i32_0 = arith.constant 0 : i32
    return %arg0, %c0_i32 : i32, i32
  }
  func.func @transform_1(%arg0: i32) -> (i32, i32) {
    %c0_i32 = arith.constant 0 : i32
    %c0_i32_0 = arith.constant 0 : i32
    return %arg0, %c0_i32 : i32, i32
  }
  func.func @transform_2(%arg0: i32) -> (i32, i32) {
    %c0_i32 = arith.constant 0 : i32
    %c0_i32_0 = arith.constant 0 : i32
    return %arg0, %c0_i32 : i32, i32
  }
}

</mosaic_0001>

<bundles_post_ra>
// kernel: _graph_size_norm_impl.1
= control target key start
LH: loop header
LB: loop body
LE: loop exit
PB: predicated region body
PF: predicated region fallthrough
CT: control target
= control target key end

     0   :  { %s118_s0 = inlined_call_operand.vmem [shape: f32[16,128], index: 0, kind: input, shape index: {}]   ;;  %s119_s1 = inlined_call_operand.vmem [shape: f32[16,1], index: 1, kind: input, shape index: {}]   ;;  %s120_s2 = inlined_call_operand.hbm [shape: f32[16,128], index: 2, kind: output, shape index: {}]  }
   0x1   :  { %v14_v0 = vld [vmem:[%s119_s1] sm:$0xff] }
   0x2   :  { %7 = vsyncpa [#allocation3], 0  ;;  %v75_v1 = vmov 0   ;;  %v15_v2 = vld [vmem:[%s119_s1 + $0x8] sm:$0xff]  ;;  %v12_v3 = vld [vmem:[%s118_s0] sm:$0xff]  ;;  %s76_s15 = smov [#allocation2]  }
   0x3   :  { %50 = vset.pattern.permute.xlu0 %v75_v1  ;;  %s35_s16 = sshll.u32 %s76_s15, 4  ;;  %v13_v6 = vld [vmem:[%s118_s0 + $0x8] sm:$0xff]  ;;  %s36_s16 = int_to_ptr.vmem [resolvable:$true] %s35_s16 }
   0x4   :  { %18 = vperm.xlu0 %50, %v14_v0   ;;  %s51_s19 = scalar_lea.vmem %s36_s16, 256  ;;  %p56_p1 = scmp.lt.s32.totalorder %s36_s16, %s36_s16 }
   0x5   :  { %p52_p0 = scmp.ne.s32.totalorder %s36_s16, %s51_s19  ;;  %p57_p2 = scmp.lt.s32.totalorder %s51_s19, %s51_s19 }
   0x7   :  { %p58_p3 = por %p57_p2, %p56_p1 }
   0x8   :  { %23 = vperm.xlu0 %50, %v15_v2  }
   0x9   :  { %p59_p4 = pnand %p58_p3, %p52_p0 }
  0x83   :  { %v19_v4 = vpop.permute.xlu0 %18 }
  0x84   :  { %v26_v5 = vmul.f32 %v19_v4, %v12_v3 }
  0x86   :  { %28 = vst [vmem:[#allocation2] sm:$0xff] %v26_v5 }
  0x87   :  { %v24_v7 = vpop.permute.xlu0 %23 }
  0x88   :  { %v27_v8 = vmul.f32 %v24_v7, %v13_v6 }
  0x8a   :  { %29 = vst [vmem:[#allocation2 + $0x8] sm:$0xff] %v27_v8 }
  0x8b   :  { %62 = shalt.err (!%p59_p4)
}
  0x8c   :  { %s63_s21 = scalar_lea.hbm %s120_s2, 256 }
  0x8d   :  { %p64_p5 = scmp.ne.s32.totalorder %s120_s2, %s63_s21  ;;  %p67_p6 = scmp.lt.u32.totalorder %s63_s21, %s120_s2 }
  0x8f   :  { %p69_p7 = pnand %p67_p6, %p64_p5 }
  0x91   :  { %72 = shalt.err (!%p69_p7)
}
  0x92   :  { %s77_s25 = smov 128   ;;  %s78_s26 = smov 8  }
  0x93   :  { %41 = dma.vmem_to_hbm [thread:$0]  %s36_s16, 256, %s120_s2, [#allocation3], %s77_s25, %s77_s25, %s78_s26  }
  0x94   :  { %73 = dma.done.wait [#allocation3], 256  }
  0x95   :  { %74 = vsyncadd [#allocation3], 4294967040 }
  0x96   :  { %45 = vsyncpa [#allocation3], 1 }

</bundles_post_ra>
